<compile_context>
chip_gen: v5e
topology: v5e:2x2
jax: 0.10.0
libtpu: 0.0.40
codegen_flags: <defaults>
</compile_context>

<pallas_src>
import functools
import math

import jax
import jax.numpy as jnp
import numpy as np
from jax.experimental import pallas as pl
from jax.experimental.pallas import tpu as pltpu


# ---------------------------------------------------------------------------
# Kernels
# ---------------------------------------------------------------------------

def _drop_path_slab_kernel(scale_ref, x_ref, o_ref):
    # scale_ref: (B,) f32 in SMEM (whole array, resident across all tiles).
    # x_ref / o_ref: (1, TR, C) tile of one sample's flattened features.
    s = scale_ref[pl.program_id(0)]                # per-sample f32 scalar
    o_ref[...] = (x_ref[...] * s).astype(o_ref.dtype)


def _drop_path_flat_kernel(scale_ref, x_ref, o_ref):
    # Fallback layout: scale_ref (B, 1) f32 resident in VMEM; x/o (B, TN) tile.
    o_ref[...] = (x_ref[...] * scale_ref[...]).astype(o_ref.dtype)


# ---------------------------------------------------------------------------
# Tiling helpers
# ---------------------------------------------------------------------------

def _sublane_min(itemsize):
    # Minimum fully-packed sublane count: 8 (f32), 16 (bf16), 32 (int8/fp8).
    return max(8, 32 // itemsize)


def _target_block_bytes():
    """Physical bytes per pipelined block (in and out each double-buffered)."""
    try:
        info = pltpu.get_tpu_info()
        # v7x-class parts (64 MiB VMEM/TC, ~3.2 TB/s HBM) amortize the
        # ~0.35 us per-grid-step overhead better with larger blocks:
        # 4 MiB * 2 bufs * (in+out) = 16 MiB, inside the 32 MiB scoped default.
        if info.vmem_capacity_bytes <= 64 * 1024 * 1024:
            return 4 * 1024 * 1024
    except Exception:
        pass
    # 2 MiB * 2 bufs * (in+out) = 8 MiB, inside v5e's 16 MiB scoped default
    # and already ~85% of HBM roofline on v5e/v6e.
    return 2 * 1024 * 1024


def _choose_slab(n, itemsize):
    """Pick (R, C) with n == R*C, C a multiple of 128, preferring R >= sublane min."""
    sub_min = _sublane_min(itemsize)
    fallback = None
    for c in (2048, 1024, 512, 256, 128):
        if n % c == 0:
            r = n // c
            if r >= sub_min:
                return r, c
            if fallback is None or r > fallback[0]:
                fallback = (r, c)
    return fallback  # None if n is not a multiple of 128


# ---------------------------------------------------------------------------
# pallas_call wrappers
# ---------------------------------------------------------------------------

def _drop_path_slab(x2, scale, r, c, itemsize):
    b, n = x2.shape
    x3 = x2.reshape(b, r, c)
    sub_min = _sublane_min(itemsize)

    rows = _target_block_bytes() // (c * itemsize)
    rows = max(sub_min, (rows // sub_min) * sub_min)
    tr = min(r, rows)
    if r >= sub_min:
        tr = max(sub_min, (tr // sub_min) * sub_min)  # keep sublane-packed

    grid = (b, pl.cdiv(r, tr))
    bytes_accessed = 2 * b * n * itemsize + b * 4

    out = pl.pallas_call(
        _drop_path_slab_kernel,
        out_shape=jax.ShapeDtypeStruct((b, r, c), x2.dtype),
        grid=grid,
        in_specs=[
            # Tiny per-sample scale vector, resident in SMEM.
            pl.BlockSpec(memory_space=pltpu.MemorySpace.SMEM),
            # Dense, fully-packed (sublane, lane) feature slabs; pipelined.
            pl.BlockSpec((1, tr, c), lambda i, j: (i, j, 0)),
        ],
        out_specs=pl.BlockSpec((1, tr, c), lambda i, j: (i, j, 0)),
        compiler_params=pltpu.CompilerParams(
            dimension_semantics=("parallel", "parallel")),
        cost_estimate=pl.CostEstimate(
            flops=b * n, bytes_accessed=bytes_accessed, transcendentals=0),
    )(scale, x3)
    return out.reshape(b, n)


def _drop_path_flat(x2, scale2, itemsize):
    # Fallback for feature counts that are not a multiple of 128.
    b, n = x2.shape
    sub_min = _sublane_min(itemsize)
    b_pad = ((b + sub_min - 1) // sub_min) * sub_min   # honest padded rows

    lanes = _target_block_bytes() // (b_pad * itemsize)
    lanes = max(128, (lanes // 128) * 128)
    tn = n if n <= lanes else lanes

    grid = (pl.cdiv(n, tn),)
    bytes_accessed = 2 * b * n * itemsize + b * 4

    return pl.pallas_call(
        _drop_path_flat_kernel,
        out_shape=jax.ShapeDtypeStruct((b, n), x2.dtype),
        grid=grid,
        in_specs=[
            pl.BlockSpec((b, 1), lambda i: (0, 0)),     # resident scale
            pl.BlockSpec((b, tn), lambda i: (0, i)),
        ],
        out_specs=pl.BlockSpec((b, tn), lambda i: (0, i)),
        compiler_params=pltpu.CompilerParams(
            dimension_semantics=("parallel",)),
        cost_estimate=pl.CostEstimate(
            flops=b * n, bytes_accessed=bytes_accessed, transcendentals=0),
    )(scale2, x2)


@functools.partial(
    jax.jit, static_argnames=("drop_path_prob", "scale_by_keep", "training"))
def drop_path_block(x, seed, *, drop_path_prob=0.0, scale_by_keep=True,
                    training=True):
    """JAX/Pallas equivalent of DropPathBlock.forward."""
    assert drop_path_prob >= 0.0
    if drop_path_prob == 0.0 or not training:
        return x

    keep_prob = 1.0 - drop_path_prob
    orig_shape = x.shape
    b = orig_shape[0]
    n = math.prod(orig_shape[1:])
    itemsize = jnp.dtype(x.dtype).itemsize

    # Per-sample Bernoulli(keep_prob) keep/scale factor, computed once in the
    # wrapper (same role as the (b,1,1,1) mask in the PyTorch module).  Kept
    # in f32 so the in-kernel multiply happens at full precision and only the
    # result is cast back to x.dtype.
    key = jax.random.PRNGKey(seed)
    keep = jax.random.bernoulli(key, p=keep_prob, shape=(b,))
    scale = keep.astype(jnp.float32)
    if scale_by_keep and keep_prob > 0.0:
        scale = scale * jnp.float32(1.0 / keep_prob)

    x2 = x.reshape(b, n)
    slab = _choose_slab(n, itemsize)
    if slab is not None:
        r, c = slab
        out = _drop_path_slab(x2, scale, r, c, itemsize)
    else:
        out = _drop_path_flat(x2, scale.reshape(b, 1), itemsize)
    return out.reshape(orig_shape)


if __name__ == "__main__":
    key = jax.random.PRNGKey(0)
    x = jax.random.normal(key, (2, 4, 16, 16), dtype=jnp.float32)

    drop_path_prob = 0.25
    keep_prob = 1.0 - drop_path_prob

    # Training path: per-sample stochastic depth.
    y = drop_path_block(
        x, seed=0, drop_path_prob=drop_path_prob, scale_by_keep=True,
        training=True)
    y = jax.block_until_ready(y)

    assert y.shape == x.shape and y.dtype == x.dtype

    # Each sample must be either dropped (all zeros) or x / keep_prob.
    xn = np.asarray(x)
    yn = np.asarray(y)
    for i in range(xn.shape[0]):
        kept = np.allclose(yn[i], xn[i] / keep_prob, rtol=1e-5, atol=1e-5)
        dropped = np.allclose(yn[i], 0.0)
        assert kept or dropped, f"sample {i}: invalid drop-path output"

    # Eval / p=0 paths: identity.
    y_eval = drop_path_block(
        x, seed=0, drop_path_prob=drop_path_prob, training=False)
    y_eval = jax.block_until_ready(y_eval)
    assert np.allclose(np.asarray(y_eval), xn)

    y_p0 = drop_path_block(x, seed=0, drop_path_prob=0.0, training=True)
    y_p0 = jax.block_until_ready(y_p0)
    assert np.allclose(np.asarray(y_p0), xn)

    # Fallback (non-multiple-of-128 feature count) path sanity check.
    x_odd = jax.random.normal(jax.random.PRNGKey(1), (2, 3, 5, 7),
                              dtype=jnp.float32)
    y_odd = jax.block_until_ready(
        drop_path_block(x_odd, seed=3, drop_path_prob=drop_path_prob,
                        training=True))
    xo = np.asarray(x_odd)
    yo = np.asarray(y_odd)
    for i in range(xo.shape[0]):
        kept = np.allclose(yo[i], xo[i] / keep_prob, rtol=1e-5, atol=1e-5)
        dropped = np.allclose(yo[i], 0.0)
        assert kept or dropped, f"odd sample {i}: invalid drop-path output"

    print("KERNEL_OK")
</pallas_src>

<mosaic_0001>
module attributes {stable_mosaic.version = 11 : i64} {
  func.func @_drop_path_slab_kernel(%arg0: i32, %arg1: i32, %arg2: memref<2xf32, #tpu.memory_space<smem>>, %arg3: memref<1x8x128xf32, #tpu.memory_space<vmem>>, %arg4: memref<1x8x128xf32, #tpu.memory_space<vmem>>) attributes {dimension_semantics = [#tpu.dimension_semantics<parallel>, #tpu.dimension_semantics<parallel>], iteration_bounds = array<i64: 2, 1>, scalar_prefetch = 0 : i64, scratch_operands = 0 : i64, tpu.core_type = #tpu.core_type<tc>, window_params = [{transform_indices = @transform_0, window_bounds = array<i64: 2>}, {transform_indices = @transform_1, window_bounds = array<i64: 1, 8, 128>}, {transform_indices = @transform_2, window_bounds = array<i64: 1, 8, 128>}]} {
    %0 = arith.index_cast %arg0 : i32 to index
    %1 = memref.load %arg2[%0] : memref<2xf32, #tpu.memory_space<smem>>
    %c0 = arith.constant 0 : index
    %c0_0 = arith.constant 0 : index
    %c0_1 = arith.constant 0 : index
    %2 = vector.load %arg3[%c0, %c0_0, %c0_1] : memref<1x8x128xf32, #tpu.memory_space<vmem>>, vector<1x8x128xf32>
    %3 = vector.broadcast %1 : f32 to vector<1x8x128xf32>
    %4 = arith.mulf %2, %3 : vector<1x8x128xf32>
    %c0_2 = arith.constant 0 : index
    %c0_3 = arith.constant 0 : index
    %c0_4 = arith.constant 0 : index
    %5 = vector.load %arg4[%c0_2, %c0_3, %c0_4] : memref<1x8x128xf32, #tpu.memory_space<vmem>>, vector<1x8x128xf32>
    tpu.vector_store %arg4[%c0_2, %c0_3, %c0_4], %4 {strides = array<i32>} : memref<1x8x128xf32, #tpu.memory_space<vmem>>, vector<1x8x128xf32>,
    return
  }
  func.func @transform_0(%arg0: i32, %arg1: i32) -> i32 {
    %c0_i32 = arith.constant 0 : i32
    %c0_i32_0 = arith.constant 0 : i32
    return %c0_i32 : i32
  }
  func.func @transform_1(%arg0: i32, %arg1: i32) -> (i32, i32, i32) {
    %c0_i32 = arith.constant 0 : i32
    %c0_i32_0 = arith.constant 0 : i32
    return %arg0, %arg1, %c0_i32 : i32, i32, i32
  }
  func.func @transform_2(%arg0: i32, %arg1: i32) -> (i32, i32, i32) {
    %c0_i32 = arith.constant 0 : i32
    %c0_i32_0 = arith.constant 0 : i32
    return %arg0, %arg1, %c0_i32 : i32, i32, i32
  }
}

</mosaic_0001>

<bundles_post_ra>
// kernel: drop_path_block.1
= control target key start
LH: loop header
LB: loop body
LE: loop exit
PB: predicated region body
PF: predicated region fallthrough
CT: control target
= control target key end

     0   :  { %7 = vsyncpa [#allocation3], 0  ;;  %s381_s9 = smov 0   ;;  %s383_s10 = smov 0   ;;  %s415_s0 = inlined_call_operand.vmem [shape: f32[2], index: 0, kind: input, shape index: {}]   ;;  %s416_s1 = inlined_call_operand.vmem [shape: f32[2,8,128], index: 1, kind: input, shape index: {}]   ;;  %s417_s2 = inlined_call_operand.vmem [shape: f32[2,8,128], index: 2, kind: output, shape index: {}]  }
   0x1   :  { %s385_s11 = smov 0  }
   0x2 LB: > { %s276_s12 = sadd.s32 4294967295, %s363_s11   ;;  %s25_s13 = sadd.s32 1, %s359_s10  ;;  %s363_s11 = sphi %s385_s11, %s13_s11   ;;  %s359_s10 = sphi %s383_s10, %s419_s10   ;;  %s355_s9 = sphi %s381_s9, %s418_s9  }
   0x3   : > { %p27_p0 = scmp.ge.s32.totalorder %s25_s13, 2  ;;  %p278_p1 = scmp.ge.s32.totalorder %s363_s11, 1 }
   0x4   : > { %p107_p2 = scmp.lt.s32.totalorder %s363_s11, 3  ;;  %p295_p4 = scmp.eq.s32.totalorder %s276_s12, 0 }
   0x5   : > { %s421_s13 = smov (%p27_p0, %s25_s13), 0  ;;  %s119_s16 = sshll.u32 %s415_s0, 4  ;;  %s120_s16 = int_to_ptr.vmem [resolvable:$true] %s119_s16 }
   0x6   : > { %p108_p3 = pnand %p278_p1, %p107_p2  ;;  %s365_s17 = smov [#allocation2]  }
   0x8   : > { %p291_p5 = pneg %p108_p3  ;;  %142 = sbr.rel (%p108_p3) target bundleno = 26 (0x1a), region = 28 }
   0xa   : > { %p292_p6 = pnand %p295_p4, %p291_p5 }
   0xc   : > { %294 = dma.vmem_to_smem (!%p292_p6), %s120_s16, 16, %s365_s17, [#allocation3]  }
   0xd   : > { %350 = dma.done.wait (%p295_p4), [#allocation3], 16  }
   0xe   : > { %352 = vsyncadd (%p295_p4), [#allocation3], 4294967280 }
   0xf   : > { %149 = sfence }
  0x10   : > { %p170_p7 = scmp.lt.s32.totalorder %s355_s9, 1  ;;  %s184_s18 = sld [smem:[#allocation2 + %s355_s9]] }
  0x12   : > { %s423_s9 = smov (!%p170_p7, %s355_s9), 1 }
  0x13   : > { %s283_s19 = sshll.u32 %s423_s9, 3 }
  0x14   : > { %s176_s22 = scalar_lea.vmem %s416_s1, %s283_s19  ;;  %s183_s25 = scalar_lea.vmem %s417_s2, %s283_s19 }
  0x15   : > { %v185_v0 = vld [vmem:[%s176_s22] sm:$0xff] }
  0x16   : > { %v186_v1 = vstv %s184_s18 }
  0x17   : > { %v187_v2 = vmul.f32 %v186_v1, %v185_v0 }
  0x19   : > { %188 = vst [vmem:[%s183_s25] sm:$0xff] %v187_v2 }
  0x1a PF: > { %s13_s11 = sadd.s32 1, %s363_s11   ;;  %s418_s9 = smov %s359_s10 }
  0x1b   : > { %p10_p8 = scmp.ge.s32.totalorder %s13_s11, 4   ;;  %s419_s10 = smov %s421_s13 }
  0x1d   :  { %12 = sbr.rel (!%p10_p8) target bundleno = 2 (0x2), region = 63 }
  0x22   :  { %214 = vsyncpa [#allocation3], 1 }
  0x23   :  { %216 = vsyncpa [#allocation3 + $0x1], 1 }

</bundles_post_ra>
